<compile_context>
chip_gen: v5e
topology: v5e:2x2
jax: 0.10.0
libtpu: 0.0.40
codegen_flags: <defaults>
</compile_context>

<pallas_src>
import math

import jax
import jax.numpy as jnp
from jax.experimental import pallas as pl
from jax.experimental.pallas import tpu as pltpu

_LANE = 128                     # vreg lane width
_SUBLANE = 8                    # f32 sublane count; row tiles stay multiples of this
_TARGET_BLOCK_BYTES = 1 << 20   # ~1 MiB per block


def _copy_kernel(x_ref, o_ref):
    # Identity copy of the current (row_tile, 128) tile — full, unmasked vregs.
    o_ref[...] = x_ref[...]


def _round_up(a: int, b: int) -> int:
    return ((a + b - 1) // b) * b


def _pallas_identity_copy(flat: jax.Array) -> jax.Array:
    """Identity-copy a 1-D array through a lane-dense (rows, 128) Pallas kernel."""
    t = flat.shape[0]
    itemsize = jnp.dtype(flat.dtype).itemsize

    # Row tile sized for ~1 MiB blocks, rounded to sublane granularity; shrink
    # it for small inputs so padding stays bounded.
    row_tile = max(
        _SUBLANE,
        (_TARGET_BLOCK_BYTES // (_LANE * itemsize)) // _SUBLANE * _SUBLANE,
    )
    rows_min = _round_up(pl.cdiv(t, _LANE), _SUBLANE)
    row_tile = min(row_tile, rows_min)

    # Pad the flat buffer up to a whole number of (row_tile, 128) blocks.
    rows = _round_up(rows_min, row_tile)
    t_pad = rows * _LANE
    if t_pad != t:
        flat = jnp.pad(flat, (0, t_pad - t))
    x2d = flat.reshape(rows, _LANE)

    out2d = pl.pallas_call(
        _copy_kernel,
        out_shape=jax.ShapeDtypeStruct((rows, _LANE), flat.dtype),
        grid=(rows // row_tile,),
        in_specs=[pl.BlockSpec((row_tile, _LANE), lambda i: (i, 0))],
        out_specs=pl.BlockSpec((row_tile, _LANE), lambda i: (i, 0)),
        # Donate the (intermediate) input buffer: the copy can write in place,
        # halving HBM allocation pressure under jit.
        input_output_aliases={0: 0},
        compiler_params=pltpu.CompilerParams(
            # Row tiles are independent -> megacore-shard across v7x's 2 TCs;
            # harmless no-op on single-TC v5e/v6e.
            dimension_semantics=("parallel",),
            # Steady state ~4 MiB (in+out, double-buffered); 32 MiB is safe on
            # v5e (128 MiB phys), v6e (128 MiB) and v7x (64 MiB phys).
            vmem_limit_bytes=32 << 20,
        ),
    )(x2d)

    out_flat = out2d.reshape(t_pad)
    return out_flat[:t] if t_pad != t else out_flat


def apu_module_forward(x: jax.Array) -> jax.Array:
    """Pallas implementation of APU_Module().forward(x).

    The empty nn.Sequential is the identity, so forward(x) == x.squeeze(dim=1):
    dim 1 is removed iff it has size 1; element order (row-major) is preserved.
    """
    if x.ndim < 2:
        raise ValueError(f"APU_Module.forward expects ndim >= 2, got {x.shape}")
    out_shape = (x.shape[0],) + x.shape[2:] if x.shape[1] == 1 else x.shape

    n = math.prod(x.shape)
    if n == 0:
        return x.reshape(out_shape)

    # TODO(synk): the squeeze itself is metadata-only; a bare reshape would be
    # free.  The Pallas identity copy below exists only to exercise the kernel
    # path and now runs at lane-dense, large-block HBM-roofline shape.
    out_flat = _pallas_identity_copy(x.reshape(n))
    return out_flat.reshape(out_shape)


if __name__ == "__main__":
    key = jax.random.PRNGKey(0)
    # Shape the forward implies: model output (B, 1, H, W); squeeze(dim=1)
    # removes the singleton channel dim -> (B, H, W).
    x = jax.random.normal(key, (2, 1, 16, 16), dtype=jnp.float32)

    y = apu_module_forward(x)
    jax.block_until_ready(y)

    y_ref = jnp.squeeze(x, axis=1)
    assert y.shape == (2, 16, 16), y.shape
    assert y.dtype == x.dtype
    assert bool(jnp.array_equal(y, y_ref))

    # Also exercise the no-op-squeeze branch (dim 1 != 1 -> shape unchanged).
    x2 = jax.random.normal(key, (2, 4, 16, 16), dtype=jnp.float32)
    y2 = apu_module_forward(x2)
    jax.block_until_ready(y2)
    assert y2.shape == x2.shape
    assert bool(jnp.array_equal(y2, x2))

    print("KERNEL_OK")
</pallas_src>

<mosaic_0001>
module attributes {stable_mosaic.version = 11 : i64} {
  func.func @_copy_kernel(%arg0: i32, %arg1: memref<8x128xf32, #tpu.memory_space<vmem>>, %arg2: memref<8x128xf32, #tpu.memory_space<vmem>>) attributes {dimension_semantics = [#tpu.dimension_semantics<parallel>], iteration_bounds = array<i64: 1>, scalar_prefetch = 0 : i64, scratch_operands = 0 : i64, tpu.core_type = #tpu.core_type<tc>, window_params = [{transform_indices = @transform_0, window_bounds = array<i64: 8, 128>}, {transform_indices = @transform_1, window_bounds = array<i64: 8, 128>}]} {
    %c0 = arith.constant 0 : index
    %c0_0 = arith.constant 0 : index
    %0 = vector.load %arg1[%c0, %c0_0] : memref<8x128xf32, #tpu.memory_space<vmem>>, vector<8x128xf32>
    %c0_1 = arith.constant 0 : index
    %c0_2 = arith.constant 0 : index
    %1 = vector.load %arg2[%c0_1, %c0_2] : memref<8x128xf32, #tpu.memory_space<vmem>>, vector<8x128xf32>
    tpu.vector_store %arg2[%c0_1, %c0_2], %0 {strides = array<i32>} : memref<8x128xf32, #tpu.memory_space<vmem>>, vector<8x128xf32>,
    return
  }
  func.func @transform_0(%arg0: i32) -> (i32, i32) {
    %c0_i32 = arith.constant 0 : i32
    %c0_i32_0 = arith.constant 0 : i32
    return %arg0, %c0_i32 : i32, i32
  }
  func.func @transform_1(%arg0: i32) -> (i32, i32) {
    %c0_i32 = arith.constant 0 : i32
    %c0_i32_0 = arith.constant 0 : i32
    return %arg0, %c0_i32 : i32, i32
  }
}

</mosaic_0001>

<bundles_post_ra>
// kernel: tpu_custom_call.1
= control target key start
LH: loop header
LB: loop body
LE: loop exit
PB: predicated region body
PF: predicated region fallthrough
CT: control target
= control target key end

     0   :  { %6 = vsyncpa [#allocation3], 0  ;;  %s114_s0 = inlined_call_operand.hbm [shape: f32[8,128], index: 0, kind: input, shape index: {}, may-alias: {0,1}]   ;;  %s115_s1 = inlined_call_operand.hbm [shape: f32[8,128], index: 1, kind: output, shape index: {}, may-alias: {0,1}]  }
   0x1   :  { %7 = vsyncpa [#allocation4], 0  ;;  %s13_s8 = sshll.u32 %s114_s0, 4  ;;  %s96_s9 = smov [#allocation2]   ;;  %s14_s8 = int_to_ptr.hbm [resolvable:$true] %s13_s8 }
   0x2   :  { %s15_s10 = sshll.u32 %s96_s9, 4  ;;  %s16_s10 = int_to_ptr.vmem [resolvable:$true] %s15_s10 }
   0x3   :  { %18 = dma.hbm_to_vmem [thread:$0]  %s14_s8, 128, %s16_s10, [#allocation3]  }
   0x4   :  { %92 = dma.done.wait [#allocation3], 128  }
   0x5   :  { %93 = vsyncadd [#allocation3], 4294967168  ;;  %s97_s11 = smov [#allocation5]   ;;  %s32_s15 = sshll.u32 %s115_s1, 4  ;;  %v23_v0 = vld [vmem:[#allocation2] sm:$0xff]  ;;  %s33_s15 = int_to_ptr.hbm [resolvable:$true] %s32_s15 }
   0x6   :  { %s30_s12 = sshll.u32 %s97_s11, 4  ;;  %24 = vst [vmem:[#allocation5] sm:$0xff] %v23_v0  ;;  %s31_s12 = int_to_ptr.vmem [resolvable:$true] %s30_s12 }
   0x7   :  { %35 = dma.vmem_to_hbm [thread:$0]  %s31_s12, 128, %s33_s15, [#allocation4]  }
   0x8   :  { %94 = dma.done.wait [#allocation4], 128  }
   0x9   :  { %95 = vsyncadd [#allocation4], 4294967168 }
   0xa   :  { %40 = vsyncpa [#allocation3], 1 }
   0xb   :  { %41 = vsyncpa [#allocation4], 1 }

</bundles_post_ra>
